<compile_context>
chip_gen: v7x
topology: tpu7x:2x2x1
jax: 0.10.0
libtpu: 0.0.40
codegen_flags: <defaults>
</compile_context>

<pallas_src>
import jax
import jax.numpy as jnp
from jax import lax
from jax.experimental import pallas as pl
from jax.experimental.pallas import tpu as pltpu


def _entity_ranking_kernel(
    ments_ref,      # (N, D)  f32  mention embeddings (left-to-right order)
    mem_init_ref,   # (M, D)  f32  initial entity memory (representatives)
    memh0_ref,      # (M, H)  f32  mem_init @ w1a   (precomputed)
    ment_h_ref,     # (N, H)  f32  ments @ w1b + b1 (precomputed mention term)
    ments_a_ref,    # (N, H)  f32  ments @ w1a      (for incremental memh update)
    new_s_ref,      # (N, 1)  f32  ments @ wn + bn  (precomputed "new entity" scores)
    w1c_ref,        # (D, H)  bf16/f32  layer-1 weights for the mem*ment term
    w2_ref,         # (1, H)  f32  layer-2 weights (as a row)
    b2_ref,         # (1, 1)  f32  layer-2 bias              [SMEM]
    scores_ref,     # (N, M+1) f32 out: coref scores, lane-dense rows
    actions_ref,    # (N, 1)   i32 out: argmax action (M == "new entity")
    mem_ref,        # (M, D)   f32 out: final entity memory state
    memh_scr,       # (M, H)   f32 scratch: cached mem @ w1a
    counts_scr,     # (M, 1)   f32 scratch: per-cluster mention counts
):
    N = ments_ref.shape[0]
    M, _ = mem_init_ref.shape

    # ---- one-time init (single grid step) ----------------------------------
    mem_ref[...] = mem_init_ref[...]
    memh_scr[...] = memh0_ref[...]
    counts_scr[...] = jnp.ones_like(counts_scr)
    # The "new entity / no link" score is mention-only: write that output
    # column once, outside the sequential loop.
    scores_ref[:, pl.ds(M, 1)] = new_s_ref[...]

    # Loop-invariant values hoisted out of the fori_loop (JAX does not CSE
    # broadcasts/iotas inside loops).
    w1c = w1c_ref[...]                                        # (D, H)
    w2_row = w2_ref[...]                                      # (1, H)
    b2 = b2_ref[0, 0]
    row_ids = lax.broadcasted_iota(jnp.int32, (M, 1), 0)      # cluster ids (sublane)
    lane_ids = lax.broadcasted_iota(jnp.int32, (1, M), 1)     # cluster ids (lane)

    def body(i, carry):
        ment = ments_ref[pl.ds(i, 1), :]                      # (1, D)
        mem = mem_ref[...]                                    # (M, D)
        memh = memh_scr[...]                                  # (M, H)

        # Layer 1 of the pairwise scorer over [mem ; ment ; mem*ment]:
        #   memh          : cached    mem  @ w1a
        #   ment_h[i]     : precomp.  ment @ w1b + b1
        #   (mem*ment)@w1c: the only per-mention MXU matmul
        x = (mem * ment).astype(w1c.dtype)                    # (M, D), implicit bcast
        h = memh + ment_h_ref[pl.ds(i, 1), :] + jnp.dot(
            x, w1c, preferred_element_type=jnp.float32)       # (M, H)
        h = jnp.maximum(h, 0.0)                               # ReLU

        # Layer 2 as an NT matmul so cluster scores come out lane-dense (1, M)
        # and the per-mention score store is a dense row store.
        s_row = jnp.dot(w2_row, h.T,
                        preferred_element_type=jnp.float32) + b2   # (1, M)

        new_s = new_s_ref[pl.ds(i, 1), :][0, 0]               # scalar

        # argmax over the M+1 actions (first max wins; on a tie with the
        # "new entity" score the cluster keeps priority, matching torch.argmax
        # first-occurrence behaviour).  Always in-range, even with NaNs.
        smax = jnp.max(s_row)
        cidx = jnp.min(jnp.where(s_row >= smax, lane_ids, M))
        idx = jnp.where(smax >= new_s, cidx, M).astype(jnp.int32)

        scores_ref[pl.ds(i, 1), pl.ds(0, M)] = s_row
        actions_ref[pl.ds(i, 1), :] = jnp.full((1, 1), idx, dtype=jnp.int32)

        # Online cluster update: running average of mention embeddings for the
        # winning cluster.  If the "new entity" action wins (idx == M), no
        # cluster row matches and the memory is unchanged.  The cached
        # mem @ w1a is updated with the same (linear) recurrence using the
        # precomputed ment @ w1a row — no per-mention matmul.
        cnt = counts_scr[...]                                 # (M, 1)
        sel = row_ids == idx                                  # (M, 1)
        inv = 1.0 / (cnt + 1.0)
        ment_a = ments_a_ref[pl.ds(i, 1), :]                  # (1, H)
        mem_ref[...] = jnp.where(sel, (mem * cnt + ment) * inv, mem)
        memh_scr[...] = jnp.where(sel, (memh * cnt + ment_a) * inv, memh)
        counts_scr[...] = jnp.where(sel, cnt + 1.0, cnt)
        return carry

    lax.fori_loop(0, N, body, 0)


def entity_ranking_forward(ments, mem_init, params, *, matmul_dtype=jnp.bfloat16):
    """Run the online entity-ranking loop as a single Pallas kernel.

    Args:
      ments:        (N, D) float32 mention embeddings (left-to-right order).
      mem_init:     (M, D) float32 initial entity memory (representatives).
      params:       dict of scorer parameters (see init_params).
      matmul_dtype: dtype for the in-kernel MXU operands (bf16 by default,
                    f32 accumulation; elementwise work stays f32).

    Returns:
      coref_scores: (N, M+1) float32
      pred_actions: (N,)     int32   (value M means "new entity")
      final_memory: (M, D)   float32
    """
    f32 = jnp.float32
    ments = ments.astype(f32)
    mem_init = mem_init.astype(f32)
    N, D = ments.shape
    M, _ = mem_init.shape
    H = params["w1a"].shape[1]

    # Mention-only / memory-only layer-1 terms: computed once as well-shaped
    # XLA matmuls instead of per-mention inside the sequential loop.
    ment_h = ments @ params["w1b"].astype(f32) + params["b1"].astype(f32)   # (N, H)
    ments_a = ments @ params["w1a"].astype(f32)                             # (N, H)
    new_s = ments @ params["wn"].astype(f32) + params["bn"].astype(f32)     # (N, 1)
    memh0 = mem_init @ params["w1a"].astype(f32)                            # (M, H)

    w1c = params["w1c"].astype(matmul_dtype)       # only weight the kernel multiplies
    w2_row = params["w2"].reshape(1, H).astype(f32)
    b2 = params["b2"].reshape(1, 1).astype(f32)

    vmem = lambda shape: pl.BlockSpec(shape, lambda i: (0,) * len(shape))

    scores, actions, final_mem = pl.pallas_call(
        _entity_ranking_kernel,
        out_shape=(
            jax.ShapeDtypeStruct((N, M + 1), jnp.float32),
            jax.ShapeDtypeStruct((N, 1), jnp.int32),
            jax.ShapeDtypeStruct((M, D), jnp.float32),
        ),
        grid_spec=pltpu.PrefetchScalarGridSpec(
            num_scalar_prefetch=0,
            grid=(1,),                     # whole doc chunk in one resident step
            in_specs=[
                vmem((N, D)),              # ments
                vmem((M, D)),              # mem_init
                vmem((M, H)),              # memh0
                vmem((N, H)),              # ment_h
                vmem((N, H)),              # ments_a
                vmem((N, 1)),              # new_s
                vmem((D, H)),              # w1c
                vmem((1, H)),              # w2_row
                pl.BlockSpec(memory_space=pltpu.MemorySpace.SMEM),  # b2 scalar
            ],
            out_specs=[
                vmem((N, M + 1)),          # scores (lane-dense rows)
                vmem((N, 1)),              # actions
                vmem((M, D)),              # final memory
            ],
            scratch_shapes=[
                pltpu.VMEM((M, H), jnp.float32),   # cached mem @ w1a
                pltpu.VMEM((M, 1), jnp.float32),   # per-cluster counts
            ],
        ),
        compiler_params=pltpu.CompilerParams(
            dimension_semantics=("arbitrary",),    # single sequential step
        ),
    )(ments, mem_init, memh0, ment_h, ments_a, new_s, w1c, w2_row, b2)

    return scores, actions[:, 0], final_mem


def entity_ranking_reference(ments, mem_init, params):
    """Pure-JAX reference of the same autoregressive ranking/update loop."""
    M, _ = mem_init.shape

    def step(carry, ment):
        mem, cnt = carry
        h = jnp.maximum(
            mem @ params["w1a"]
            + ment[None, :] @ params["w1b"]
            + params["b1"]
            + (mem * ment[None, :]) @ params["w1c"],
            0.0,
        )
        s = (h @ params["w2"] + params["b2"])[:, 0]                       # (M,)
        new_s = (ment[None, :] @ params["wn"] + params["bn"])[0, 0]
        col = jnp.concatenate([s, new_s[None]], axis=0)                   # (M+1,)
        idx = jnp.argmax(col).astype(jnp.int32)                           # first max wins
        sel = (jnp.arange(M) == idx)[:, None]
        new_mem = jnp.where(sel, (mem * cnt + ment[None, :]) / (cnt + 1.0), mem)
        new_cnt = jnp.where(sel, cnt + 1.0, cnt)
        return (new_mem, new_cnt), (col, idx)

    (mem_f, _), (scores, actions) = lax.scan(
        step, (mem_init, jnp.ones((M, 1), jnp.float32)), ments)
    return scores, actions, mem_f


def init_params(key, D, H):
    """Deterministic synthetic parameters for the pairwise scorer MLP."""
    ks = jax.random.split(key, 5)
    scale = 0.1
    return {
        "w1a": scale * jax.random.normal(ks[0], (D, H), jnp.float32),
        "w1b": scale * jax.random.normal(ks[1], (D, H), jnp.float32),
        "w1c": scale * jax.random.normal(ks[2], (D, H), jnp.float32),
        "b1": jnp.zeros((1, H), jnp.float32),
        "w2": scale * jax.random.normal(ks[3], (H, 1), jnp.float32),
        "b2": jnp.zeros((1, 1), jnp.float32),
        "wn": scale * jax.random.normal(ks[4], (D, 1), jnp.float32),
        "bn": jnp.zeros((1, 1), jnp.float32),
    }


if __name__ == "__main__":
    # Small shapes consistent with the module's forward:
    #   N = predicted mentions in the chunk, M = entity clusters (representatives)
    #   D = span embedding size, H = scorer hidden size
    N, M, D, H = 8, 8, 32, 32

    key = jax.random.PRNGKey(0)
    k_m, k_e, k_p = jax.random.split(key, 3)

    mention_embs = jax.random.normal(k_m, (N, D), jnp.float32)
    entity_memory_init = jax.random.normal(k_e, (M, D), jnp.float32)
    params = init_params(k_p, D, H)

    # Correctness check (f32 matmuls) against the pure-JAX reference.
    scores32, actions32, mem32 = entity_ranking_forward(
        mention_embs, entity_memory_init, params, matmul_dtype=jnp.float32)
    ref_scores, ref_actions, ref_mem = entity_ranking_reference(
        mention_embs, entity_memory_init, params)
    assert jnp.allclose(scores32, ref_scores, atol=1e-3, rtol=1e-3)
    assert jnp.all(actions32 == ref_actions)
    assert jnp.allclose(mem32, ref_mem, atol=1e-3, rtol=1e-3)

    # Default (bf16 matmul inputs, f32 accumulation) performance configuration.
    scores, actions, final_mem = entity_ranking_forward(
        mention_embs, entity_memory_init, params)
    jax.block_until_ready((scores, actions, final_mem))

    assert scores.shape == (N, M + 1)
    assert actions.shape == (N,)
    assert final_mem.shape == (M, D)
    print("KERNEL_OK")
</pallas_src>

<mosaic_0001>
module attributes {stable_mosaic.version = 11 : i64} {
  func.func @_entity_ranking_kernel(%arg0: i32, %arg1: memref<8x32xf32, #tpu.memory_space<vmem>>, %arg2: memref<8x32xf32, #tpu.memory_space<vmem>>, %arg3: memref<8x32xf32, #tpu.memory_space<vmem>>, %arg4: memref<8x32xf32, #tpu.memory_space<vmem>>, %arg5: memref<8x32xf32, #tpu.memory_space<vmem>>, %arg6: memref<8x1xf32, #tpu.memory_space<vmem>>, %arg7: memref<32x32xf32, #tpu.memory_space<vmem>>, %arg8: memref<1x32xf32, #tpu.memory_space<vmem>>, %arg9: memref<1x1xf32, #tpu.memory_space<smem>>, %arg10: memref<8x9xf32, #tpu.memory_space<vmem>>, %arg11: memref<8x1xi32, #tpu.memory_space<vmem>>, %arg12: memref<8x32xf32, #tpu.memory_space<vmem>>, %arg13: memref<8x32xf32, #tpu.memory_space<vmem>>, %arg14: memref<8x1xf32, #tpu.memory_space<vmem>>) attributes {dimension_semantics = [#tpu.dimension_semantics<arbitrary>], iteration_bounds = array<i64: 1>, scalar_prefetch = 0 : i64, scratch_operands = 2 : i64, tpu.core_type = #tpu.core_type<tc>, window_params = [{pipeline_mode = #tpu.pipeline_mode<synchronous>, transform_indices = @transform_0, window_bounds = array<i64: 8, 32>}, {pipeline_mode = #tpu.pipeline_mode<synchronous>, transform_indices = @transform_1, window_bounds = array<i64: 8, 32>}, {pipeline_mode = #tpu.pipeline_mode<synchronous>, transform_indices = @transform_2, window_bounds = array<i64: 8, 32>}, {pipeline_mode = #tpu.pipeline_mode<synchronous>, transform_indices = @transform_3, window_bounds = array<i64: 8, 32>}, {pipeline_mode = #tpu.pipeline_mode<synchronous>, transform_indices = @transform_4, window_bounds = array<i64: 8, 32>}, {pipeline_mode = #tpu.pipeline_mode<synchronous>, transform_indices = @transform_5, window_bounds = array<i64: 8, 1>}, {pipeline_mode = #tpu.pipeline_mode<synchronous>, transform_indices = @transform_6, window_bounds = array<i64: 32, 32>}, {pipeline_mode = #tpu.pipeline_mode<synchronous>, transform_indices = @transform_7, window_bounds = array<i64: 1, 32>}, {transform_indices = @transform_8, window_bounds = array<i64: 1, 1>}, {pipeline_mode = #tpu.pipeline_mode<synchronous>, transform_indices = @transform_9, window_bounds = array<i64: 8, 9>}, {pipeline_mode = #tpu.pipeline_mode<synchronous>, transform_indices = @transform_10, window_bounds = array<i64: 8, 1>}, {pipeline_mode = #tpu.pipeline_mode<synchronous>, transform_indices = @transform_11, window_bounds = array<i64: 8, 32>}]} {
    %c0 = arith.constant 0 : index
    %c0_0 = arith.constant 0 : index
    %0 = vector.load %arg2[%c0, %c0_0] : memref<8x32xf32, #tpu.memory_space<vmem>>, vector<8x32xf32>
    %c0_1 = arith.constant 0 : index
    %c0_2 = arith.constant 0 : index
    %1 = vector.load %arg12[%c0_1, %c0_2] : memref<8x32xf32, #tpu.memory_space<vmem>>, vector<8x32xf32>
    tpu.vector_store %arg12[%c0_1, %c0_2], %0 {strides = array<i32>} : memref<8x32xf32, #tpu.memory_space<vmem>>, vector<8x32xf32>,
    %c0_3 = arith.constant 0 : index
    %c0_4 = arith.constant 0 : index
    %2 = vector.load %arg3[%c0_3, %c0_4] : memref<8x32xf32, #tpu.memory_space<vmem>>, vector<8x32xf32>
    %c0_5 = arith.constant 0 : index
    %c0_6 = arith.constant 0 : index
    %3 = vector.load %arg13[%c0_5, %c0_6] : memref<8x32xf32, #tpu.memory_space<vmem>>, vector<8x32xf32>
    tpu.vector_store %arg13[%c0_5, %c0_6], %2 {strides = array<i32>} : memref<8x32xf32, #tpu.memory_space<vmem>>, vector<8x32xf32>,
    %cst = arith.constant 1.000000e+00 : f32
    %4 = vector.broadcast %cst : f32 to vector<8x1xf32>
    %c0_7 = arith.constant 0 : index
    %c0_8 = arith.constant 0 : index
    %5 = vector.load %arg14[%c0_7, %c0_8] : memref<8x1xf32, #tpu.memory_space<vmem>>, vector<8x1xf32>
    tpu.vector_store %arg14[%c0_7, %c0_8], %4 {strides = array<i32>} : memref<8x1xf32, #tpu.memory_space<vmem>>, vector<8x1xf32>,
    %c0_9 = arith.constant 0 : index
    %c0_10 = arith.constant 0 : index
    %6 = vector.load %arg6[%c0_9, %c0_10] : memref<8x1xf32, #tpu.memory_space<vmem>>, vector<8x1xf32>
    %c0_11 = arith.constant 0 : index
    %c8 = arith.constant 8 : index
    %7 = vector.load %arg10[%c0_11, %c8] : memref<8x9xf32, #tpu.memory_space<vmem>>, vector<8x1xf32>
    tpu.vector_store %arg10[%c0_11, %c8], %6 {strides = array<i32>} : memref<8x9xf32, #tpu.memory_space<vmem>>, vector<8x1xf32>,
    %c0_12 = arith.constant 0 : index
    %c0_13 = arith.constant 0 : index
    %8 = vector.load %arg7[%c0_12, %c0_13] : memref<32x32xf32, #tpu.memory_space<vmem>>, vector<32x32xf32>
    %c0_14 = arith.constant 0 : index
    %c0_15 = arith.constant 0 : index
    %9 = vector.load %arg8[%c0_14, %c0_15] : memref<1x32xf32, #tpu.memory_space<vmem>>, vector<1x32xf32>
    %c0_16 = arith.constant 0 : index
    %c0_17 = arith.constant 0 : index
    %10 = memref.load %arg9[%c0_16, %c0_17] : memref<1x1xf32, #tpu.memory_space<smem>>
    %11 = tpu.iota {dimensions = array<i32: 0>} : vector<8x1xi32>
    %12 = tpu.iota {dimensions = array<i32: 1>} : vector<1x8xi32>
    %c0_i32 = arith.constant 0 : i32
    %c8_i32 = arith.constant 8 : i32
    %13 = arith.addi %c0_i32, %c8_i32 : i32
    %c1_i32 = arith.constant 1 : i32
    scf.for %arg15 = %c0_i32 to %13 step %c1_i32  : i32 {
      %14 = arith.index_cast %arg15 : i32 to index
      %c0_19 = arith.constant 0 : index
      %15 = vector.load %arg1[%14, %c0_19] : memref<8x32xf32, #tpu.memory_space<vmem>>, vector<1x32xf32>
      %c0_20 = arith.constant 0 : index
      %c0_21 = arith.constant 0 : index
      %16 = vector.load %arg12[%c0_20, %c0_21] : memref<8x32xf32, #tpu.memory_space<vmem>>, vector<8x32xf32>
      %c0_22 = arith.constant 0 : index
      %c0_23 = arith.constant 0 : index
      %17 = vector.load %arg13[%c0_22, %c0_23] : memref<8x32xf32, #tpu.memory_space<vmem>>, vector<8x32xf32>
      %18 = vector.broadcast %15 : vector<1x32xf32> to vector<8x32xf32>
      %19 = arith.mulf %16, %18 : vector<8x32xf32>
      %20 = arith.index_cast %arg15 : i32 to index
      %c0_24 = arith.constant 0 : index
      %21 = vector.load %arg4[%20, %c0_24] : memref<8x32xf32, #tpu.memory_space<vmem>>, vector<1x32xf32>
      %22 = vector.broadcast %21 : vector<1x32xf32> to vector<8x32xf32>
      %23 = arith.addf %17, %22 : vector<8x32xf32>
      %cst_25 = arith.constant dense<0.000000e+00> : vector<8x32xf32>
      %24 = tpu.matmul %19, %8, %cst_25 {dimension_numbers = #tpu.dot_dimension_numbers<[1], [0], [0], [1], [0, 0, 1, 1], [], []>} : vector<8x32xf32>, vector<32x32xf32>, vector<8x32xf32> -> vector<8x32xf32>
      %25 = arith.addf %23, %24 : vector<8x32xf32>
      %cst_26 = arith.constant 0.000000e+00 : f32
      %26 = vector.broadcast %cst_26 : f32 to vector<8x32xf32>
      %27 = arith.maximumf %25, %26 : vector<8x32xf32>
      %28 = tpu.transpose %27, [1, 0] : vector<8x32xf32> -> vector<32x8xf32>
      %cst_27 = arith.constant dense<0.000000e+00> : vector<1x8xf32>
      %29 = tpu.matmul %9, %28, %cst_27 {dimension_numbers = #tpu.dot_dimension_numbers<[1], [0], [0], [1], [0, 0, 1, 1], [], []>} : vector<1x32xf32>, vector<32x8xf32>, vector<1x8xf32> -> vector<1x8xf32>
      %30 = vector.broadcast %10 : f32 to vector<1x8xf32>
      %31 = arith.addf %29, %30 : vector<1x8xf32>
      %32 = arith.index_cast %arg15 : i32 to index
      %c0_28 = arith.constant 0 : index
      %33 = vector.load %arg6[%32, %c0_28] : memref<8x1xf32, #tpu.memory_space<vmem>>, vector<1x1xf32>
      %34 = vector.extract %33[0, 0] : f32 from vector<1x1xf32>
      %35 = vector.shape_cast %31 : vector<1x8xf32> to vector<1x1x8xf32>
      %cst_29 = arith.constant dense<0xFF800000> : vector<1xf32>
      %36 = vector.multi_reduction <maximumf>, %35, %cst_29 [1, 2] : vector<1x1x8xf32> to vector<1xf32>
      %37 = vector.shape_cast %36 : vector<1xf32> to vector<1x1x1xf32>
      %38 = vector.extract %37[0, 0, 0] : f32 from vector<1x1x1xf32>
      %39 = vector.broadcast %38 : f32 to vector<1x8xf32>
      %40 = arith.cmpf oge, %31, %39 : vector<1x8xf32>
      %c8_i32_30 = arith.constant 8 : i32
      %41 = vector.broadcast %c8_i32_30 : i32 to vector<1x8xi32>
      %42 = arith.select %40, %12, %41 : vector<1x8xi1>, vector<1x8xi32>
      %43 = vector.shape_cast %42 : vector<1x8xi32> to vector<1x1x8xi32>
      %cst_31 = arith.constant dense<2147483647> : vector<1xi32>
      %44 = vector.multi_reduction <minsi>, %43, %cst_31 [1, 2] : vector<1x1x8xi32> to vector<1xi32>
      %45 = vector.shape_cast %44 : vector<1xi32> to vector<1x1x1xi32>
      %46 = vector.extract %45[0, 0, 0] : i32 from vector<1x1x1xi32>
      %47 = arith.cmpf oge, %38, %34 : f32
      %c8_i32_32 = arith.constant 8 : i32
      %48 = arith.select %47, %46, %c8_i32_32 : i32
      %49 = arith.index_cast %arg15 : i32 to index
      %c0_33 = arith.constant 0 : index
      %50 = vector.load %arg10[%49, %c0_33] : memref<8x9xf32, #tpu.memory_space<vmem>>, vector<1x8xf32>
      tpu.vector_store %arg10[%49, %c0_33], %31 {strides = array<i32>} : memref<8x9xf32, #tpu.memory_space<vmem>>, vector<1x8xf32>,
      %51 = vector.broadcast %48 : i32 to vector<1x1xi32>
      %52 = arith.index_cast %arg15 : i32 to index
      %c0_34 = arith.constant 0 : index
      %53 = vector.load %arg11[%52, %c0_34] : memref<8x1xi32, #tpu.memory_space<vmem>>, vector<1x1xi32>
      tpu.vector_store %arg11[%52, %c0_34], %51 {strides = array<i32>} : memref<8x1xi32, #tpu.memory_space<vmem>>, vector<1x1xi32>,
      %c0_35 = arith.constant 0 : index
      %c0_36 = arith.constant 0 : index
      %54 = vector.load %arg14[%c0_35, %c0_36] : memref<8x1xf32, #tpu.memory_space<vmem>>, vector<8x1xf32>
      %55 = vector.broadcast %48 : i32 to vector<8x1xi32>
      %56 = arith.cmpi eq, %11, %55 : vector<8x1xi32>
      %cst_37 = arith.constant 1.000000e+00 : f32
      %57 = vector.broadcast %cst_37 : f32 to vector<8x1xf32>
      %58 = arith.addf %54, %57 : vector<8x1xf32>
      %cst_38 = arith.constant 1.000000e+00 : f32
      %59 = vector.broadcast %cst_38 : f32 to vector<8x1xf32>
      %60 = arith.divf %59, %58 : vector<8x1xf32>
      %61 = arith.index_cast %arg15 : i32 to index
      %c0_39 = arith.constant 0 : index
      %62 = vector.load %arg5[%61, %c0_39] : memref<8x32xf32, #tpu.memory_space<vmem>>, vector<1x32xf32>
      %63 = vector.broadcast %54 : vector<8x1xf32> to vector<8x32xf32>
      %64 = arith.mulf %16, %63 : vector<8x32xf32>
      %65 = vector.broadcast %15 : vector<1x32xf32> to vector<8x32xf32>
      %66 = arith.addf %64, %65 : vector<8x32xf32>
      %67 = vector.broadcast %60 : vector<8x1xf32> to vector<8x32xf32>
      %68 = arith.mulf %66, %67 : vector<8x32xf32>
      %69 = vector.shape_cast %56 : vector<8x1xi1> to vector<8x1xi1>
      %70 = vector.broadcast %69 : vector<8x1xi1> to vector<8x32xi1>
      %71 = arith.select %70, %68, %16 : vector<8x32xi1>, vector<8x32xf32>
      %c0_40 = arith.constant 0 : index
      %c0_41 = arith.constant 0 : index
      %72 = vector.load %arg12[%c0_40, %c0_41] : memref<8x32xf32, #tpu.memory_space<vmem>>, vector<8x32xf32>
      tpu.vector_store %arg12[%c0_40, %c0_41], %71 {strides = array<i32>} : memref<8x32xf32, #tpu.memory_space<vmem>>, vector<8x32xf32>,
      %73 = vector.broadcast %54 : vector<8x1xf32> to vector<8x32xf32>
      %74 = arith.mulf %17, %73 : vector<8x32xf32>
      %75 = vector.broadcast %62 : vector<1x32xf32> to vector<8x32xf32>
      %76 = arith.addf %74, %75 : vector<8x32xf32>
      %77 = vector.broadcast %60 : vector<8x1xf32> to vector<8x32xf32>
      %78 = arith.mulf %76, %77 : vector<8x32xf32>
      %79 = vector.shape_cast %56 : vector<8x1xi1> to vector<8x1xi1>
      %80 = vector.broadcast %79 : vector<8x1xi1> to vector<8x32xi1>
      %81 = arith.select %80, %78, %17 : vector<8x32xi1>, vector<8x32xf32>
      %c0_42 = arith.constant 0 : index
      %c0_43 = arith.constant 0 : index
      %82 = vector.load %arg13[%c0_42, %c0_43] : memref<8x32xf32, #tpu.memory_space<vmem>>, vector<8x32xf32>
      tpu.vector_store %arg13[%c0_42, %c0_43], %81 {strides = array<i32>} : memref<8x32xf32, #tpu.memory_space<vmem>>, vector<8x32xf32>,
      %cst_44 = arith.constant 1.000000e+00 : f32
      %83 = vector.broadcast %cst_44 : f32 to vector<8x1xf32>
      %84 = arith.addf %54, %83 : vector<8x1xf32>
      %85 = arith.select %56, %84, %54 : vector<8x1xi1>, vector<8x1xf32>
      %c0_45 = arith.constant 0 : index
      %c0_46 = arith.constant 0 : index
      %86 = vector.load %arg14[%c0_45, %c0_46] : memref<8x1xf32, #tpu.memory_space<vmem>>, vector<8x1xf32>
      tpu.vector_store %arg14[%c0_45, %c0_46], %85 {strides = array<i32>} : memref<8x1xf32, #tpu.memory_space<vmem>>, vector<8x1xf32>,
    }
    %c8_i32_18 = arith.constant 8 : i32
    return
  }
  func.func @transform_0(%arg0: i32) -> (i32, i32) {
    %c0_i32 = arith.constant 0 : i32
    %c0_i32_0 = arith.constant 0 : i32
    %c0_i32_1 = arith.constant 0 : i32
    return %c0_i32, %c0_i32_0 : i32, i32
  }
  func.func @transform_1(%arg0: i32) -> (i32, i32) {
    %c0_i32 = arith.constant 0 : i32
    %c0_i32_0 = arith.constant 0 : i32
    %c0_i32_1 = arith.constant 0 : i32
    return %c0_i32, %c0_i32_0 : i32, i32
  }
  func.func @transform_2(%arg0: i32) -> (i32, i32) {
    %c0_i32 = arith.constant 0 : i32
    %c0_i32_0 = arith.constant 0 : i32
    %c0_i32_1 = arith.constant 0 : i32
    return %c0_i32, %c0_i32_0 : i32, i32
  }
  func.func @transform_3(%arg0: i32) -> (i32, i32) {
    %c0_i32 = arith.constant 0 : i32
    %c0_i32_0 = arith.constant 0 : i32
    %c0_i32_1 = arith.constant 0 : i32
    return %c0_i32, %c0_i32_0 : i32, i32
  }
  func.func @transform_4(%arg0: i32) -> (i32, i32) {
    %c0_i32 = arith.constant 0 : i32
    %c0_i32_0 = arith.constant 0 : i32
    %c0_i32_1 = arith.constant 0 : i32
    return %c0_i32, %c0_i32_0 : i32, i32
  }
  func.func @transform_5(%arg0: i32) -> (i32, i32) {
    %c0_i32 = arith.constant 0 : i32
    %c0_i32_0 = arith.constant 0 : i32
    %c0_i32_1 = arith.constant 0 : i32
    return %c0_i32, %c0_i32_0 : i32, i32
  }
  func.func @transform_6(%arg0: i32) -> (i32, i32) {
    %c0_i32 = arith.constant 0 : i32
    %c0_i32_0 = arith.constant 0 : i32
    %c0_i32_1 = arith.constant 0 : i32
    return %c0_i32, %c0_i32_0 : i32, i32
  }
  func.func @transform_7(%arg0: i32) -> (i32, i32) {
    %c0_i32 = arith.constant 0 : i32
    %c0_i32_0 = arith.constant 0 : i32
    %c0_i32_1 = arith.constant 0 : i32
    return %c0_i32, %c0_i32_0 : i32, i32
  }
  func.func @transform_8(%arg0: i32) -> (i32, i32) {
    %c0_i32 = arith.constant 0 : i32
    %c0_i32_0 = arith.constant 0 : i32
    %c0_i32_1 = arith.constant 0 : i32
    return %c0_i32, %c0_i32_0 : i32, i32
  }
  func.func @transform_9(%arg0: i32) -> (i32, i32) {
    %c0_i32 = arith.constant 0 : i32
    %c0_i32_0 = arith.constant 0 : i32
    %c0_i32_1 = arith.constant 0 : i32
    return %c0_i32, %c0_i32_0 : i32, i32
  }
  func.func @transform_10(%arg0: i32) -> (i32, i32) {
    %c0_i32 = arith.constant 0 : i32
    %c0_i32_0 = arith.constant 0 : i32
    %c0_i32_1 = arith.constant 0 : i32
    return %c0_i32, %c0_i32_0 : i32, i32
  }
  func.func @transform_11(%arg0: i32) -> (i32, i32) {
    %c0_i32 = arith.constant 0 : i32
    %c0_i32_0 = arith.constant 0 : i32
    %c0_i32_1 = arith.constant 0 : i32
    return %c0_i32, %c0_i32_0 : i32, i32
  }
}

</mosaic_0001>

<bundles_post_ra>
// kernel: tpu_custom_call.1
= control target key start
LH: loop header
LB: loop body
LE: loop exit
PB: predicated region body
PF: predicated region fallthrough
CT: control target
= control target key end

     0   :  { %18 = vsyncpa [#allocation6], 0  ;;  %s915_s0 = inlined_call_operand.hbm [shape: f32[8,32], index: 0, kind: input, shape index: {}]   ;;  %s916_s1 = inlined_call_operand.hbm [shape: f32[8,32], index: 1, kind: input, shape index: {}]   ;;  %s917_s2 = inlined_call_operand.hbm [shape: f32[8,32], index: 2, kind: input, shape index: {}]   ;;  %s918_s3 = inlined_call_operand.hbm [shape: f32[8,32], index: 3, kind: input, shape index: {}]   ;;  %s919_s4 = inlined_call_operand.hbm [shape: f32[8,32], index: 4, kind: input, shape index: {}]   ;;  %s920_s5 = inlined_call_operand.vmem [shape: f32[8,1], index: 5, kind: input, shape index: {}]   ;;  %s921_s6 = inlined_call_operand.vmem [shape: f32[32,32], index: 6, kind: input, shape index: {}]   ;;  %s922_s7 = inlined_call_operand.vmem [shape: f32[1,32], index: 7, kind: input, shape index: {}]   ;;  %s923_s8 = inlined_call_operand.<no memory space> [shape: f32[1,1], index: 8, kind: input, shape index: {}]   ;;  %s924_s9 = inlined_call_operand.hbm [shape: f32[8,9], index: 9, kind: output, shape index: {0}]   ;;  %s925_s10 = inlined_call_operand.vmem [shape: s32[8,1], index: 10, kind: output, shape index: {1}]   ;;  %s926_s11 = inlined_call_operand.hbm [shape: f32[8,32], index: 11, kind: output, shape index: {2}]  }
   0x1   :  { %19 = vsyncpa [#allocation9], 0 }
   0x2   :  { %20 = vsyncpa [#allocation12], 0 }
   0x3   :  { %21 = vsyncpa [#allocation7], 0 }
   0x4   :  { %22 = vsyncpa [#allocation16], 0  ;;  %s663_s17 = smov [#allocation8]   ;;  %s664_s19 = smov [#allocation11]  }
   0x5   :  { %s39_s18 = sshll.u32 %s663_s17, 4  ;;  %s59_s20 = sshll.u32 %s664_s19, 4  ;;  %s40_s18 = int_to_ptr.vmem [resolvable:$true] %s39_s18  ;;  %s60_s20 = int_to_ptr.vmem [resolvable:$true] %s59_s20 }
   0x6   :  { %s491_s23 = scalar_lea.hbm %s916_s1, 128 }
   0x7   :  { %p492_p0 = scmp.ne.s32.totalorder %s916_s1, %s491_s23  ;;  %p495_p1 = scmp.lt.u32.totalorder %s491_s23, %s916_s1 }
   0x9   :  { %p497_p2 = pnand %p495_p1, %p492_p0 }
   0xb   :  { %500 = shalt.err (!%p497_p2)
}
   0xc   :  { %s501_s28 = scalar_lea.vmem %s40_s18, 128  ;;  %p506_p4 = scmp.lt.s32.totalorder %s40_s18, %s40_s18 }
   0xd   :  { %p502_p3 = scmp.ne.s32.totalorder %s40_s18, %s501_s28  ;;  %p507_p5 = scmp.lt.s32.totalorder %s501_s28, %s501_s28 }
   0xf   :  { %p508_p6 = por %p507_p5, %p506_p4 }
  0x11   :  { %p509_p7 = pnand %p508_p6, %p502_p3 }
  0x13   :  { %512 = shalt.err (!%p509_p7)
}
  0x14   :  { %42 = dma.hbm_to_vmem [thread:$0]  %s916_s1, 128, %s40_s18, [#allocation9]  }
  0x15   :  { %s513_s14 = scalar_lea.hbm %s918_s3, 128 }
  0x16   :  { %p514_p8 = scmp.ne.s32.totalorder %s918_s3, %s513_s14  ;;  %p517_p9 = scmp.lt.u32.totalorder %s513_s14, %s918_s3 }
  0x18   :  { %p519_p10 = pnand %p517_p9, %p514_p8 }
  0x1a   :  { %522 = shalt.err (!%p519_p10)
}
  0x1b   :  { %s523_s21 = scalar_lea.vmem %s60_s20, 128  ;;  %p528_p12 = scmp.lt.s32.totalorder %s60_s20, %s60_s20 }
  0x1c   :  { %p524_p11 = scmp.ne.s32.totalorder %s60_s20, %s523_s21  ;;  %p529_p13 = scmp.lt.s32.totalorder %s523_s21, %s523_s21 }
  0x1e   :  { %p530_p0 = por %p529_p13, %p528_p12 }
  0x20   :  { %p531_p1 = pnand %p530_p0, %p524_p11 }
  0x22   :  { %534 = shalt.err (!%p531_p1)
}
  0x23   :  { %62 = dma.hbm_to_vmem [thread:$0]  %s918_s3, 128, %s60_s20, [#allocation12]  }
  0x24   :  { %s665_s22 = smov [#allocation5]   ;;  %s666_s24 = smov [#allocation10]  }
  0x25   :  { %s29_s23 = sshll.u32 %s665_s22, 4  ;;  %s49_s25 = sshll.u32 %s666_s24, 4  ;;  %s30_s23 = int_to_ptr.vmem [resolvable:$true] %s29_s23  ;;  %s50_s25 = int_to_ptr.vmem [resolvable:$true] %s49_s25 }
  0x26   :  { %s535_s28 = scalar_lea.hbm %s915_s0, 128 }
  0x27   :  { %p536_p2 = scmp.ne.s32.totalorder %s915_s0, %s535_s28  ;;  %p539_p3 = scmp.lt.u32.totalorder %s535_s28, %s915_s0 }
  0x29   :  { %p541_p4 = pnand %p539_p3, %p536_p2 }
  0x2b   :  { %544 = shalt.err (!%p541_p4)
}
  0x2c   :  { %s545_s3 = scalar_lea.vmem %s30_s23, 128  ;;  %p550_p6 = scmp.lt.s32.totalorder %s30_s23, %s30_s23 }
  0x2d   :  { %p546_p5 = scmp.ne.s32.totalorder %s30_s23, %s545_s3  ;;  %p551_p7 = scmp.lt.s32.totalorder %s545_s3, %s545_s3 }
  0x2f   :  { %p552_p8 = por %p551_p7, %p550_p6 }
  0x31   :  { %p553_p9 = pnand %p552_p8, %p546_p5 }
  0x33   :  { %556 = shalt.err (!%p553_p9)
}
  0x34   :  { %32 = dma.hbm_to_vmem [thread:$0]  %s915_s0, 128, %s30_s23, [#allocation6]  }
  0x35   :  { %s557_s17 = scalar_lea.hbm %s917_s2, 128 }
  0x36   :  { %p558_p10 = scmp.ne.s32.totalorder %s917_s2, %s557_s17  ;;  %p561_p11 = scmp.lt.u32.totalorder %s557_s17, %s917_s2 }
  0x38   :  { %p563_p12 = pnand %p561_p11, %p558_p10 }
  0x3a   :  { %566 = shalt.err (!%p563_p12)
}
  0x3b   :  { %s567_s22 = scalar_lea.vmem %s50_s25, 128  ;;  %p572_p0 = scmp.lt.s32.totalorder %s50_s25, %s50_s25 }
  0x3c   :  { %p568_p13 = scmp.ne.s32.totalorder %s50_s25, %s567_s22  ;;  %p573_p1 = scmp.lt.s32.totalorder %s567_s22, %s567_s22 }
  0x3e   :  { %p574_p2 = por %p573_p1, %p572_p0 }
  0x40   :  { %p575_p3 = pnand %p574_p2, %p568_p13 }
  0x42   :  { %578 = shalt.err (!%p575_p3)
}
  0x43   :  { %52 = dma.hbm_to_vmem [thread:$0]  %s917_s2, 128, %s50_s25, [#allocation9]  }
  0x44   :  { %s667_s24 = smov [#allocation13]   ;;  %s579_s29 = scalar_lea.hbm %s919_s4, 128 }
  0x45   :  { %s69_s26 = sshll.u32 %s667_s24, 4  ;;  %p580_p4 = scmp.ne.s32.totalorder %s919_s4, %s579_s29  ;;  %s70_s26 = int_to_ptr.vmem [resolvable:$true] %s69_s26 }
  0x46   :  { %p583_p5 = scmp.lt.u32.totalorder %s579_s29, %s919_s4 }
  0x48   :  { %p585_p6 = pnand %p583_p5, %p580_p4 }
  0x4a   :  { %588 = shalt.err (!%p585_p6)
}
  0x4b   :  { %s589_s20 = scalar_lea.vmem %s70_s26, 128  ;;  %p594_p8 = scmp.lt.s32.totalorder %s70_s26, %s70_s26 }
  0x4c   :  { %p590_p7 = scmp.ne.s32.totalorder %s70_s26, %s589_s20  ;;  %p595_p9 = scmp.lt.s32.totalorder %s589_s20, %s589_s20 }
  0x4e   :  { %p596_p10 = por %p595_p9, %p594_p8 }
  0x50   :  { %p597_p11 = pnand %p596_p10, %p590_p7 }
  0x52   :  { %600 = shalt.err (!%p597_p11)
}
  0x53   :  { %72 = dma.hbm_to_vmem [thread:$0]  %s919_s4, 128, %s70_s26, [#allocation12]  }
  0x54   :  { %649 = dma.done.wait [#allocation6], 128  }
  0x55   :  { %650 = vsyncadd [#allocation6], 4294967168 }
  0x56   :  { %651 = dma.done.wait [#allocation9], 256  }
  0x57   :  { %652 = vsyncadd [#allocation9], 4294967040 }
  0x58   :  { %653 = dma.done.wait [#allocation12], 256  }
  0x59   :  { %654 = vsyncadd [#allocation12], 4294967040  ;;  %vm101_vm0 = vcmask 7168   ;;  %v116_v0 = vlaneseq  ;;  %v668_v1 = vmov 1.0   ;;  %vm97_vm1 = vcmask 261120   ;;  %v96_v4 = vld [vmem:[#allocation8] sm:$0xff] }
  0x5a   :  { %102 = vst.msk [vmem:[#allocation3] sm:$0xff] %vm101_vm0, %v668_v1  ;;  %v99_v5 = vld [vmem:[#allocation10] sm:$0xff]  ;;  %v811_v7 = vld [vmem:[%s921_s6 + $0x8] sm:$0xff]  ;;  %v816_v8 = vld [vmem:[%s921_s6 + $0x10] sm:$0xff]  ;;  %s669_s24 = smov 8   ;;  %vm108_vm2 = vcmask 72768  }
  0x5b   :  { %v797_v2 = vshrl.u32 %v116_v0, 7  ;;  %v799_v3 = vand.u32 127, %v116_v0  ;;  %v804_v6 = vld [vmem:[%s921_s6] sm:$0xff]  ;;  %98 = vst.msk [vmem:[#allocation15] sm:$0xff] %vm97_vm1, %v96_v4  ;;  %100 = vst.msk [vmem:[#allocation2] sm:$0xff] %vm97_vm1, %v99_v5  ;;  %v821_v9 = vld [vmem:[%s921_s6 + $0x18] sm:$0xff] }
  0x5c   :  { %v826_v10 = vld [vmem:[%s922_s7] sm:$0x1]  ;;  %s831_s26 = smov 0  }
  0x5d   :  { %v103_v11 = vld [vmem:[%s920_s5] sm:$0xff] }
  0x5e   :  { %105 = vrot.lane.b32.xlu0 %v103_v11, %s669_s24 }
  0xd0   :  { %v106_v12 = vpop.permute.xlu0 %105 }
  0xd1   :  { %109 = vst.msk [vmem:[#allocation14] sm:$0xff] %vm108_vm2, %v106_v12 }
  0xd2 LB: > { %v455_v13 = vpack.c.bf16 %v811_v7, %v804_v6  ;;  %v670_v14 = vmov 0.0|0.0   ;;  %v458_v15 = vpack.c.bf16 %v821_v9, %v816_v8  ;;  %vm671_vm3 = vmmov 0   ;;  %v840_v17 = vld [vmem:[#allocation15] sm:$0xff]  ;;  %s126_s6 = scalar_lea.vmem [#allocation5], %s661_s26  ;;  %s135_s7 = scalar_lea.vmem [#allocation11], %s661_s26  ;;  %v344_v45 = vld [vmem:[#allocation3] sm:$0xff]  ;;  %s661_s26 = sphi %s831_s26, %s125_s26  }
  0xd3   : > { %454 = vmatprep.subr.bf16.mxu0 %v670_v14  ;;  %v672_v16 = vmov 0.0   ;;  %v843_v18 = vld [vmem:[%s126_s6] ss:$0 sm:$0xff]  ;;  %v217_v27 = vstv %s923_s8  ;;  %vm297_vm4 = vcmask 57344   ;;  %s338_s29 = scalar_lea.vmem [#allocation14], %s661_s26  ;;  %s294_s13 = scalar_lea.vmem %s920_s5, %s661_s26  ;;  %v673_v46 = vmov 0  }
  0xd4   : > { %456 = vmatpush3.bf16.msra.mxu0 %v455_v13  ;;  %446 = vmatprep.mubr.msk.f32.mxu0 %vm671_vm3, %v672_v16  ;;  %v134_v19 = vmul.f32 %v843_v18, %v840_v17  ;;  %v848_v20 = vld [vmem:[#allocation2] sm:$0xff]  ;;  %v346_v47 = vadd.f32 1.0, %v344_v45  ;;  %s349_s2 = scalar_lea.vmem [#allocation13], %s661_s26  ;;  %s341_s15 = scalar_lea.vmem %s925_s10, %s661_s26  ;;  %vm342_vm10 = vcmask 0  }
  0xd5   : > { %457 = vmatprep.subr.bf16.mxu0 %v670_v14  ;;  %449 = vmatprep.subr.mxu1 %v672_v16  ;;  %v426_v21 = vld [vmem:[%s135_s7] ss:$0 sm:$0xff]  ;;  %s125_s26 = sadd.s32 1, %s661_s26  }
  0xd6   : > { %451 = vmatprep.mubr.msk.f32.mxu1 %vm671_vm3, %v672_v16  ;;  %v141_v22 = vadd.f32 %v426_v21, %v848_v20  ;;  %v295_v32 = vld [vmem:[%s294_s13] sm:$0x1]  ;;  %487 = vset.pattern.permute.xlu1 %v673_v46  ;;  %489 = vrcp.f32 %v346_v47  ;;  %p122_p13 = scmp.ge.s32.totalorder %s125_s26, 8  }
  0xd7   : > { %460 = vpush %v295_v32  ;;  %488 = vset.pattern.permute.xlu0 %v673_v46  ;;  %v430_v5 = vld [vmem:[%s349_s2] ss:$0 sm:$0xff]  ;;  %s674_s16 = smov (%p122_p13), [#allocation14]   ;;  %s675_s19 = smov (%p122_p13), [#allocation15]  }
  0xd8   : > { %459 = vmatpush3.bf16.msra.mxu0 %v458_v15  ;;  %s385_s17 = sshll.u32 (%p122_p13), %s674_s16, 4  ;;  %s397_s21 = sshll.u32 (%p122_p13), %s675_s19, 4  ;;  %s386_s17 = int_to_ptr.vmem [resolvable:$true] %s385_s17  ;;  %s398_s21 = int_to_ptr.vmem [resolvable:$true] %s397_s21 }
  0xd9   :  { %s601_s1 = scalar_lea.vmem (%p122_p13), %s386_s17, 128  ;;  %p606_p1 = scmp.lt.s32.totalorder (%p122_p13), %s386_s17, %s386_s17 }
  0xda   :  { %p602_p0 = scmp.ne.s32.totalorder (%p122_p13), %s386_s17, %s601_s1  ;;  %p607_p2 = scmp.lt.s32.totalorder (%p122_p13), %s601_s1, %s601_s1 }
  0xdb   : > { %447 = vmatmul.mubr.msk.f32.vlgmr.msra.gmra.mrb[0].mxu0 %vm97_vm1, %v134_v19 }
  0xdc   :  { %p608_p3 = por (%p122_p13), %p607_p2, %p606_p1 }
  0xde   :  { %p609_p4 = pnand (%p122_p13), %p608_p3, %p602_p0 }
  0xe0   : > { %v490_v48 = vpop.eup %489 }
 0x108   : > { %s865_s3 = spop %460 }
 0x1ae   : > { %v211_v23 = vpop.f32.mrb[0].mxu0 }
 0x1af   : > { %v215_v24 = vadd.f32 %v211_v23, %v141_v22  ;;  %v448_v25 = vpop.f32.mrb[1].mxu0 }
 0x1b1   : > { %v216_v26 = vmax.f32 %v215_v24, 0.0 }
 0x1b3   : > { %450 = vmatpush3.xpose.msk.msra.mxu1 %vm97_vm1, %v216_v26 }
 0x1b6   : > { %452 = vmatmul.mubr.msk.f32.vlgmr.msra.gmra.mrb[0].mxu1 %vm97_vm1, %v826_v10 }
 0x289   : > { %v290_v28 = vpop.f32.mrb[0].mxu1 }
 0x28a   : > { %v291_v29 = vadd.f32 %v290_v28, %v217_v27  ;;  %v453_v30 = vpop.f32.mrb[1].mxu1 }
 0x28c   : > { %v298_v31 = vsel %vm297_vm4, %v291_v29, -inf  ;;  %339 = vst.msk [vmem:[%s338_s29] sm:$0x1] %vm297_vm4, %v291_v29 }
 0x28d   : > { %299 = vmax.xlane.f32.xlu0 %v298_v31 }
 0x31a   : > { %v300_v33 = vpop.xlane.xlu0 %299 }
 0x31b   : > { %v301_v34 = vrot.slane %v300_v33, 4 }
 0x31d   : > { %v302_v35 = vmax.f32 %v300_v33, %v301_v34 }
 0x31f   : > { %v303_v36 = vrot.slane %v302_v35, 2 }
 0x321   : > { %v304_v37 = vmax.f32 %v302_v35, %v303_v36 }
 0x323   : > { %v305_v38 = vrot.slane %v304_v37, 1 }
 0x325   : > { %v306_v39 = vmax.f32 %v304_v37, %v305_v38 }
 0x327   : > { %462 = vpush %v306_v39 }
 0x358   : > { %s867_s20 = spop %462 }
 0x359   : > { %v308_v40 = vstv %s867_s20  ;;  %p336_p12 = scmp.ge.f32.partialorder %s867_s20, %s865_s3 }
 0x35a   : > { %vm309_vm5 = vcmp.ge.f32.partialorder %v291_v29, %v308_v40 }
 0x35b   : > { %v310_v41 = vsel %vm309_vm5, %v799_v3, 8 }
 0x35c   : > { %v311_v42 = vsel %vm297_vm4, %v310_v41, 2147483647 }
 0x35d   : > { %v313_v43 = vshra.s32 %v311_v42, 16  ;;  %v312_v49 = vand.u32 65535, %v311_v42 }
 0x35f   : > { %v315_v44 = vcvt.s32.f32 %v313_v43  ;;  %v314_v51 = vcvt.s32.f32 %v312_v49 }
 0x361   : > { %316 = vmin.xlane.f32.xlu0 %v315_v44 }
 0x377   : > { %360 = vperm.xlu0 %488, %v490_v48  }
 0x3ee   : > { %v317_v50 = vpop.xlane.xlu0 %316 }
 0x3ef   : > { %vm318_vm6 = vcmp.eq.f32.partialorder %v315_v44, %v317_v50  ;;  %v323_v53 = vcvt.f32.s32 %v317_v50 }
 0x3f0   : > { %v319_v52 = vsel %vm318_vm6, %v314_v51, inf }
 0x3f1   : > { %320 = vmin.xlane.f32.xlu1 %v319_v52  ;;  %v324_v55 = vshll.u32 %v323_v53, 16 }
 0x3f6   : > { %v361_v13 = vpop.permute.xlu0 %360 }
 0x402   : > { %353 = vperm.xlu1 %487, %v344_v45  }
 0x47e   : > { %v321_v54 = vpop.xlane.xlu1 %320 }
 0x47f   : > { %v322_v56 = vcvt.f32.s32 %v321_v54 }
 0x481   : > { %v325_v57 = vadd.s32 %v324_v55, %v322_v56 }
 0x482   : > { %v354_v0 = vpop.permute.xlu1 %353 }
 0x483   : > { %v326_v58 = vrot.slane %v325_v57, 4  ;;  %v356_v1 = vmul.f32 %v354_v0, %v840_v17  ;;  %v368_v4 = vmul.f32 %v354_v0, %v848_v20 }
 0x485   : > { %vm327_vm7 = vcmp.lt.s32.totalorder %v325_v57, %v326_v58  ;;  %v357_v11 = vadd.f32 %v843_v18, %v356_v1  ;;  %v373_v12 = vadd.f32 %v430_v5, %v368_v4 }
 0x486   : > { %v328_v59 = vsel %vm327_vm7, %v325_v57, %v326_v58 }
 0x487   : > { %v329_v60 = vrot.slane %v328_v59, 2  ;;  %v363_v14 = vmul.f32 %v361_v13, %v357_v11  ;;  %v374_v15 = vmul.f32 %v373_v12, %v361_v13 }
 0x489   : > { %vm330_vm8 = vcmp.lt.s32.totalorder %v328_v59, %v329_v60 }
 0x48a   : > { %v331_v61 = vsel %vm330_vm8, %v328_v59, %v329_v60 }
 0x48b   : > { %v332_v62 = vrot.slane %v331_v61, 1 }
 0x48d   : > { %vm333_vm9 = vcmp.lt.s32.totalorder %v331_v61, %v332_v62 }
 0x48e   : > { %v334_v63 = vsel %vm333_vm9, %v331_v61, %v332_v62 }
 0x48f   : > { %464 = vpush %v334_v63 }
 0x4c0   : > { %s465_s25 = spop %464  ;;  %124 = sbr.rel (!%p122_p13) target bundleno = 210 (0xd2), region = 105 }
 0x4c1   : > { %s928_s25 = smov (!%p336_p12, %s465_s25), 8 }
 0x4c2   : > { %v340_v16 = vstv %s928_s25 }
 0x4c3   : > { %343 = vst.msk [vmem:[%s341_s15] sm:$0x1] %vm342_vm10, %v340_v16  ;;  %vm345_vm11 = vcmp.eq.s32.totalorder %v797_v2, %v340_v16 }
 0x4c4   : > { %v377_v19 = vsel %vm345_vm11, %v346_v47, %v344_v45  ;;  %v366_v21 = vsel %vm345_vm11, %v363_v14, %v840_v17  ;;  %v375_v18 = vsel %vm345_vm11, %v374_v15, %v848_v20 }
 0x4c5   : > { %378 = vst.msk [vmem:[#allocation3] sm:$0xff] %vm101_vm0, %v377_v19 }
 0x4c6   : > { %367 = vst.msk [vmem:[#allocation15] sm:$0xff] %vm97_vm1, %v366_v21  ;;  %376 = vst.msk [vmem:[#allocation2] sm:$0xff] %vm97_vm1, %v375_v18 }
 0x4c7   :  { %612 = shalt.err (!%p609_p4)
}
 0x4c8   :  { %s613_s0 = scalar_lea.hbm %s924_s9, 128 }
 0x4c9   :  { %p614_p5 = scmp.ne.s32.totalorder %s924_s9, %s613_s0  ;;  %p617_p6 = scmp.lt.u32.totalorder %s613_s0, %s924_s9 }
 0x4cb   :  { %p619_p7 = pnand %p617_p6, %p614_p5 }
 0x4cd   :  { %622 = shalt.err (!%p619_p7)
}
 0x4ce   :  { %388 = dma.vmem_to_hbm [thread:$0]  %s386_s17, 128, %s924_s9, [#allocation7]  }
 0x4cf   :  { %s623_s6 = scalar_lea.vmem %s398_s21, 128  ;;  %p628_p9 = scmp.lt.s32.totalorder %s398_s21, %s398_s21 }
 0x4d0   :  { %p624_p8 = scmp.ne.s32.totalorder %s398_s21, %s623_s6  ;;  %p629_p10 = scmp.lt.s32.totalorder %s623_s6, %s623_s6 }
 0x4d2   :  { %p630_p11 = por %p629_p10, %p628_p9 }
 0x4d4   :  { %p631_p12 = pnand %p630_p11, %p624_p8 }
 0x4d6   :  { %634 = shalt.err (!%p631_p12)
}
 0x4d7   :  { %s635_s28 = scalar_lea.hbm %s926_s11, 128 }
 0x4d8   :  { %p636_p13 = scmp.ne.s32.totalorder %s926_s11, %s635_s28  ;;  %p639_p0 = scmp.lt.u32.totalorder %s635_s28, %s926_s11 }
 0x4da   :  { %p641_p1 = pnand %p639_p0, %p636_p13 }
 0x4dc   :  { %644 = shalt.err (!%p641_p1)
}
 0x4dd   :  { %400 = dma.vmem_to_hbm [thread:$0]  %s398_s21, 128, %s926_s11, [#allocation16]  }
 0x4de   :  { %655 = dma.done.wait [#allocation7], 128  }
 0x4df   :  { %656 = vsyncadd [#allocation7], 4294967168 }
 0x4e0   :  { %657 = dma.done.wait [#allocation16], 128  }
 0x4e1   :  { %658 = vsyncadd [#allocation16], 4294967168 }
 0x4e2   :  { %409 = vsyncpa [#allocation6], 1 }
 0x4e3   :  { %410 = vsyncpa [#allocation9], 1 }
 0x4e4   :  { %411 = vsyncpa [#allocation12], 1 }
 0x4e5   :  { %412 = vsyncpa [#allocation7], 1 }
 0x4e6   :  { %413 = vsyncpa [#allocation16], 1 }

</bundles_post_ra>
